<compile_context>
chip_gen: v7x
topology: tpu7x:2x2x1
jax: 0.10.0
libtpu: 0.0.40
codegen_flags: <defaults>
</compile_context>

<pallas_src>
import functools

import numpy as np

import jax
import jax.numpy as jnp
from jax.experimental import pallas as pl
from jax.experimental.pallas import tpu as pltpu

MEAN = (0.4914, 0.4822, 0.4465)
STD = (0.2023, 0.1994, 0.201)


# ----------------------------------------------------------------------------
# Glue: bicubic interpolation matrices + RandomResizedCrop parameter sampling
# ----------------------------------------------------------------------------
def _cubic_kernel(x, a=-0.75):
    """PyTorch-style bicubic kernel (a = -0.75)."""
    x = jnp.abs(x)
    x2 = x * x
    x3 = x2 * x
    w1 = (a + 2.0) * x3 - (a + 3.0) * x2 + 1.0
    w2 = a * x3 - 5.0 * a * x2 + 8.0 * a * x - 4.0 * a
    return jnp.where(x <= 1.0, w1, jnp.where(x < 2.0, w2, 0.0))


def _interp_matrix(start, length, src_size, out_size):
    """Bicubic resize matrix (out_size, src_size): maps crop [start, start+length)
    of a length-`src_size` axis onto `out_size` output samples."""
    oy = jnp.arange(out_size, dtype=jnp.float32)
    scale = length.astype(jnp.float32) / out_size
    src = start.astype(jnp.float32) + (oy + 0.5) * scale - 0.5
    base = jnp.floor(src)
    t = src - base
    base_i = base.astype(jnp.int32)
    mat = jnp.zeros((out_size, src_size), dtype=jnp.float32)
    for k in range(-1, 3):  # 4 bicubic taps
        w = _cubic_kernel(t - k)                                    # (out_size,)
        idx = jnp.clip(base_i + k, 0, src_size - 1)                 # edge replicate
        mat = mat + w[:, None] * jax.nn.one_hot(idx, src_size, dtype=jnp.float32)
    return mat


def _sample_crop_params(key, img_h, img_w, scale=(0.2, 1.0), ratio=(3.0 / 4.0, 4.0 / 3.0)):
    """Sample (i, j, h, w) a la torchvision RandomResizedCrop.get_params."""
    k1, k2, k3, k4 = jax.random.split(key, 4)
    area = float(img_h * img_w)
    target_area = area * jax.random.uniform(k1, (), minval=scale[0], maxval=scale[1])
    log_ratio = jax.random.uniform(
        k2, (), minval=float(np.log(ratio[0])), maxval=float(np.log(ratio[1])))
    ar = jnp.exp(log_ratio)
    w = jnp.round(jnp.sqrt(target_area * ar)).astype(jnp.int32)
    h = jnp.round(jnp.sqrt(target_area / ar)).astype(jnp.int32)
    # TODO(synk): torchvision retries up to 10 times then falls back to a center
    # crop; here a single attempt is clamped to the valid range instead.
    w = jnp.clip(w, 1, img_w)
    h = jnp.clip(h, 1, img_h)
    # (tiny modulo bias vs torchvision's sampler; harmless in practice)
    i = jax.random.randint(k3, (), 0, 2 ** 30) % (img_h - h + 1)
    j = jax.random.randint(k4, (), 0, 2 ** 30) % (img_w - w + 1)
    return i, j, h, w


# ----------------------------------------------------------------------------
# Pallas kernel: per-image crop+resize = 2 bf16 MXU matmuls, fused
#                (/255 + Normalize) epilogue, lane-dense (S, C*S) output slab.
# ----------------------------------------------------------------------------
def _augment_kernel(x_ref, wy_ref, wxt_ref, bias_ref, o_ref, *, imgs_per_step):
    bias = bias_ref[...]                                                # (1, C*S) f32
    for g in range(imgs_per_step):  # unrolled; imgs_per_step is compile-time
        # uint8 -> f32 -> bf16 widen (VPU work; input DMA stays uint8)
        img = x_ref[g].astype(jnp.float32).astype(jnp.bfloat16)        # (H, C*W)
        rows = jnp.dot(wy_ref[g], img,
                       preferred_element_type=jnp.float32)             # (S, C*W) f32
        out = jnp.dot(rows.astype(jnp.bfloat16), wxt_ref[g],
                      preferred_element_type=jnp.float32)               # (S, C*S) f32
        # scale 1/(255*std_c) already folded into wxt; add -mean_c/std_c here.
        o_ref[g] = out + bias


def _pick_group(n, per_image_bytes, budget=8 << 20):
    """Images per grid step: amortize per-step overhead, stay well inside VMEM."""
    for g in (8, 4, 2, 1):
        if n % g == 0 and 2 * g * per_image_bytes <= budget:
            return g
    return 1


def augment(x, key, image_size):
    """x: uint8 NCHW image batch. Returns float32 NCHW (N, C, image_size, image_size)."""
    n, c, h, w = x.shape
    assert c == len(MEAN), "Normalize statistics are defined for 3 channels"
    s = image_size

    kcrop, kflip = jax.random.split(key)
    crop_keys = jax.random.split(kcrop, n)
    ci, cj, ch_len, cw_len = jax.vmap(lambda k: _sample_crop_params(k, h, w))(crop_keys)

    wy = jax.vmap(lambda st, ln: _interp_matrix(st, ln, h, s))(ci, ch_len)   # (N, S, H)
    wx = jax.vmap(lambda st, ln: _interp_matrix(st, ln, w, s))(cj, cw_len)   # (N, S, W)

    # RandomHorizontalFlip folded into the width interpolation matrix.
    flip = jax.random.bernoulli(kflip, 0.5, (n,))
    wx = jnp.where(flip[:, None, None], wx[:, ::-1, :], wx)

    # Fold ToDtype(scale=True) + Normalize scale into Wx^T and build a per-image
    # block-diagonal (C*W, C*S) matrix: the width pass of all channels becomes a
    # single matmul whose result is the lane-dense output slab.
    scale_diag = jnp.asarray(
        np.diag([1.0 / (255.0 * sd) for sd in STD[:c]]), jnp.float32)        # (C, C)
    wxt = jnp.swapaxes(wx, 1, 2)                                             # (N, W, S)
    wxt_blk = jnp.einsum('nws,cd->ncwds', wxt, scale_diag)
    wxt_blk = wxt_blk.reshape(n, c * w, c * s).astype(jnp.bfloat16)          # (N, C*W, C*S)

    wy = wy.astype(jnp.bfloat16)                                             # (N, S, H)

    bias = np.repeat(
        np.asarray([-m / sd for m, sd in zip(MEAN[:c], STD[:c])], dtype=np.float32),
        s)[None, :]                                                          # (1, C*S)
    bias = jnp.asarray(bias)

    # NCHW uint8 -> (N, H, C*W) uint8 so the height pass handles all channels
    # at once (layout plumbing on tiny uint8 data).
    x_hcw = jnp.transpose(x, (0, 2, 1, 3)).reshape(n, h, c * w)

    per_img_bytes = (h * c * w                       # uint8 image
                     + 2 * (s * h + c * w * c * s)   # bf16 weights
                     + 4 * s * c * s)                # f32 output slab
    g = _pick_group(n, per_img_bytes)

    kernel = functools.partial(_augment_kernel, imgs_per_step=g)

    flops = 2 * n * (s * h * c * w + s * c * w * c * s)
    bytes_accessed = n * per_img_bytes

    out = pl.pallas_call(
        kernel,
        out_shape=jax.ShapeDtypeStruct((n, s, c * s), jnp.float32),
        grid=(n // g,),
        in_specs=[
            pl.BlockSpec((g, h, c * w), lambda b: (b, 0, 0)),        # uint8 images
            pl.BlockSpec((g, s, h), lambda b: (b, 0, 0)),            # Wy (bf16)
            pl.BlockSpec((g, c * w, c * s), lambda b: (b, 0, 0)),    # blockdiag Wx^T (bf16)
            pl.BlockSpec((1, c * s), lambda b: (0, 0)),              # normalize bias (f32)
        ],
        out_specs=pl.BlockSpec((g, s, c * s), lambda b: (b, 0, 0)),
        compiler_params=pltpu.CompilerParams(
            dimension_semantics=("parallel",)),
        cost_estimate=pl.CostEstimate(
            flops=flops, transcendentals=0, bytes_accessed=bytes_accessed),
    )(x_hcw, wy, wxt_blk, bias)

    # Lane-dense (N, S, C*S) slab -> NCHW. Pure layout plumbing in the wrapper.
    return out.reshape(n, s, c, s).transpose(0, 2, 1, 3)


if __name__ == "__main__":
    # TODO(synk): no antialias pre-filter for strong down-scales and no uint8
    # round/clamp between resize and ToDtype (torchvision does both), so values
    # can differ slightly from the reference pipeline.
    image_size = 16
    batch, channels = 2, 3       # Normalize has 3-channel statistics
    in_h = in_w = 32

    key = jax.random.PRNGKey(0)
    kx, kaug = jax.random.split(key)
    x = jax.random.randint(kx, (batch, channels, in_h, in_w),
                           0, 256, dtype=jnp.int32).astype(jnp.uint8)

    y = augment(x, kaug, image_size)
    jax.block_until_ready(y)
    assert y.shape == (batch, channels, image_size, image_size)
    assert y.dtype == jnp.float32
    print("KERNEL_OK")
</pallas_src>

<mosaic_0001>
module attributes {stable_mosaic.version = 11 : i64} {
  func.func @_augment_kernel(%arg0: i32, %arg1: memref<2x32x96xi8, #tpu.memory_space<vmem>>, %arg2: memref<2x16x32xbf16, #tpu.memory_space<vmem>>, %arg3: memref<2x96x48xbf16, #tpu.memory_space<vmem>>, %arg4: memref<1x48xf32, #tpu.memory_space<vmem>>, %arg5: memref<2x16x48xf32, #tpu.memory_space<vmem>>) attributes {dimension_semantics = [#tpu.dimension_semantics<parallel>], iteration_bounds = array<i64: 1>, scalar_prefetch = 0 : i64, scratch_operands = 0 : i64, tpu.core_type = #tpu.core_type<tc>, window_params = [{transform_indices = @transform_0, window_bounds = array<i64: 2, 32, 96>}, {transform_indices = @transform_1, window_bounds = array<i64: 2, 16, 32>}, {transform_indices = @transform_2, window_bounds = array<i64: 2, 96, 48>}, {pipeline_mode = #tpu.pipeline_mode<synchronous>, transform_indices = @transform_3, window_bounds = array<i64: 1, 48>}, {transform_indices = @transform_4, window_bounds = array<i64: 2, 16, 48>}]} {
    %c0 = arith.constant 0 : index
    %c0_0 = arith.constant 0 : index
    %0 = vector.load %arg4[%c0, %c0_0] : memref<1x48xf32, #tpu.memory_space<vmem>>, vector<1x48xf32>
    %c0_1 = arith.constant 0 : index
    %c0_2 = arith.constant 0 : index
    %c0_3 = arith.constant 0 : index
    %1 = vector.load %arg1[%c0_1, %c0_2, %c0_3] : memref<2x32x96xi8, #tpu.memory_space<vmem>>, vector<1x32x96xi8>
    %2 = vector.shape_cast %1 : vector<1x32x96xi8> to vector<32x96xi8>
    %3 = arith.uitofp %2 : vector<32x96xi8> to vector<32x96xf32>
    %4 = arith.truncf %3 : vector<32x96xf32> to vector<32x96xbf16>
    %c0_4 = arith.constant 0 : index
    %c0_5 = arith.constant 0 : index
    %c0_6 = arith.constant 0 : index
    %5 = vector.load %arg2[%c0_4, %c0_5, %c0_6] : memref<2x16x32xbf16, #tpu.memory_space<vmem>>, vector<1x16x32xbf16>
    %6 = vector.shape_cast %5 : vector<1x16x32xbf16> to vector<16x32xbf16>
    %cst = arith.constant dense<0.000000e+00> : vector<16x96xf32>
    %7 = tpu.matmul %6, %4, %cst {dimension_numbers = #tpu.dot_dimension_numbers<[1], [0], [0], [1], [0, 0, 1, 1], [], []>} : vector<16x32xbf16>, vector<32x96xbf16>, vector<16x96xf32> -> vector<16x96xf32>
    %8 = arith.truncf %7 : vector<16x96xf32> to vector<16x96xbf16>
    %c0_7 = arith.constant 0 : index
    %c0_8 = arith.constant 0 : index
    %c0_9 = arith.constant 0 : index
    %9 = vector.load %arg3[%c0_7, %c0_8, %c0_9] : memref<2x96x48xbf16, #tpu.memory_space<vmem>>, vector<1x96x48xbf16>
    %10 = vector.shape_cast %9 : vector<1x96x48xbf16> to vector<96x48xbf16>
    %cst_10 = arith.constant dense<0.000000e+00> : vector<16x48xf32>
    %11 = tpu.matmul %8, %10, %cst_10 {dimension_numbers = #tpu.dot_dimension_numbers<[1], [0], [0], [1], [0, 0, 1, 1], [], []>} : vector<16x96xbf16>, vector<96x48xbf16>, vector<16x48xf32> -> vector<16x48xf32>
    %12 = vector.broadcast %0 : vector<1x48xf32> to vector<16x48xf32>
    %13 = arith.addf %11, %12 : vector<16x48xf32>
    %c0_11 = arith.constant 0 : index
    %c0_12 = arith.constant 0 : index
    %c0_13 = arith.constant 0 : index
    %14 = vector.load %arg5[%c0_11, %c0_12, %c0_13] : memref<2x16x48xf32, #tpu.memory_space<vmem>>, vector<1x16x48xf32>
    %15 = vector.shape_cast %14 : vector<1x16x48xf32> to vector<16x48xf32>
    %16 = vector.shape_cast %13 : vector<16x48xf32> to vector<1x16x48xf32>
    tpu.vector_store %arg5[%c0_11, %c0_12, %c0_13], %16 {strides = array<i32>} : memref<2x16x48xf32, #tpu.memory_space<vmem>>, vector<1x16x48xf32>,
    %c1 = arith.constant 1 : index
    %c0_14 = arith.constant 0 : index
    %c0_15 = arith.constant 0 : index
    %17 = vector.load %arg1[%c1, %c0_14, %c0_15] : memref<2x32x96xi8, #tpu.memory_space<vmem>>, vector<1x32x96xi8>
    %18 = vector.shape_cast %17 : vector<1x32x96xi8> to vector<32x96xi8>
    %19 = arith.uitofp %18 : vector<32x96xi8> to vector<32x96xf32>
    %20 = arith.truncf %19 : vector<32x96xf32> to vector<32x96xbf16>
    %c1_16 = arith.constant 1 : index
    %c0_17 = arith.constant 0 : index
    %c0_18 = arith.constant 0 : index
    %21 = vector.load %arg2[%c1_16, %c0_17, %c0_18] : memref<2x16x32xbf16, #tpu.memory_space<vmem>>, vector<1x16x32xbf16>
    %22 = vector.shape_cast %21 : vector<1x16x32xbf16> to vector<16x32xbf16>
    %cst_19 = arith.constant dense<0.000000e+00> : vector<16x96xf32>
    %23 = tpu.matmul %22, %20, %cst_19 {dimension_numbers = #tpu.dot_dimension_numbers<[1], [0], [0], [1], [0, 0, 1, 1], [], []>} : vector<16x32xbf16>, vector<32x96xbf16>, vector<16x96xf32> -> vector<16x96xf32>
    %24 = arith.truncf %23 : vector<16x96xf32> to vector<16x96xbf16>
    %c1_20 = arith.constant 1 : index
    %c0_21 = arith.constant 0 : index
    %c0_22 = arith.constant 0 : index
    %25 = vector.load %arg3[%c1_20, %c0_21, %c0_22] : memref<2x96x48xbf16, #tpu.memory_space<vmem>>, vector<1x96x48xbf16>
    %26 = vector.shape_cast %25 : vector<1x96x48xbf16> to vector<96x48xbf16>
    %cst_23 = arith.constant dense<0.000000e+00> : vector<16x48xf32>
    %27 = tpu.matmul %24, %26, %cst_23 {dimension_numbers = #tpu.dot_dimension_numbers<[1], [0], [0], [1], [0, 0, 1, 1], [], []>} : vector<16x96xbf16>, vector<96x48xbf16>, vector<16x48xf32> -> vector<16x48xf32>
    %28 = vector.broadcast %0 : vector<1x48xf32> to vector<16x48xf32>
    %29 = arith.addf %27, %28 : vector<16x48xf32>
    %c1_24 = arith.constant 1 : index
    %c0_25 = arith.constant 0 : index
    %c0_26 = arith.constant 0 : index
    %30 = vector.load %arg5[%c1_24, %c0_25, %c0_26] : memref<2x16x48xf32, #tpu.memory_space<vmem>>, vector<1x16x48xf32>
    %31 = vector.shape_cast %30 : vector<1x16x48xf32> to vector<16x48xf32>
    %32 = vector.shape_cast %29 : vector<16x48xf32> to vector<1x16x48xf32>
    tpu.vector_store %arg5[%c1_24, %c0_25, %c0_26], %32 {strides = array<i32>} : memref<2x16x48xf32, #tpu.memory_space<vmem>>, vector<1x16x48xf32>,
    return
  }
  func.func @transform_0(%arg0: i32) -> (i32, i32, i32) {
    %c0_i32 = arith.constant 0 : i32
    %c0_i32_0 = arith.constant 0 : i32
    %c0_i32_1 = arith.constant 0 : i32
    return %arg0, %c0_i32, %c0_i32_0 : i32, i32, i32
  }
  func.func @transform_1(%arg0: i32) -> (i32, i32, i32) {
    %c0_i32 = arith.constant 0 : i32
    %c0_i32_0 = arith.constant 0 : i32
    %c0_i32_1 = arith.constant 0 : i32
    return %arg0, %c0_i32, %c0_i32_0 : i32, i32, i32
  }
  func.func @transform_2(%arg0: i32) -> (i32, i32, i32) {
    %c0_i32 = arith.constant 0 : i32
    %c0_i32_0 = arith.constant 0 : i32
    %c0_i32_1 = arith.constant 0 : i32
    return %arg0, %c0_i32, %c0_i32_0 : i32, i32, i32
  }
  func.func @transform_3(%arg0: i32) -> (i32, i32) {
    %c0_i32 = arith.constant 0 : i32
    %c0_i32_0 = arith.constant 0 : i32
    %c0_i32_1 = arith.constant 0 : i32
    return %c0_i32, %c0_i32_0 : i32, i32
  }
  func.func @transform_4(%arg0: i32) -> (i32, i32, i32) {
    %c0_i32 = arith.constant 0 : i32
    %c0_i32_0 = arith.constant 0 : i32
    %c0_i32_1 = arith.constant 0 : i32
    return %arg0, %c0_i32, %c0_i32_0 : i32, i32, i32
  }
}

</mosaic_0001>

<bundles_post_ra>
// kernel: tpu_custom_call.1
= control target key start
LH: loop header
LB: loop body
LE: loop exit
PB: predicated region body
PF: predicated region fallthrough
CT: control target
= control target key end

     0   :  { %v492_v2 = vmov 0.0   ;;  %vm493_vm0 = vmmov 0   ;;  %vm30_vm1 = vcmask 261120   ;;  %s593_s0 = inlined_call_operand.vmem [shape: u8[2,32,96], index: 0, kind: input, shape index: {}]   ;;  %s594_s1 = inlined_call_operand.vmem [shape: bf16[2,16,32], index: 1, kind: input, shape index: {}]   ;;  %s595_s2 = inlined_call_operand.vmem [shape: bf16[2,96,48], index: 2, kind: input, shape index: {}]   ;;  %s596_s3 = inlined_call_operand.vmem [shape: f32[1,48], index: 3, kind: input, shape index: {}]   ;;  %s597_s4 = inlined_call_operand.hbm [shape: f32[2,16,48], index: 4, kind: output, shape index: {}]  }
   0x1   :  { %v20_v0 = vld [vmem:[%s593_s0] sm:$0xff]  ;;  %v357_v1 = vld [vmem:[%s593_s0 + $0x8] sm:$0xff]  ;;  %401 = vmatprep.subr.bf16.mxu1 %v492_v2  ;;  %425 = vmatprep.subr.bf16.mxu0 %v492_v2  ;;  %v457_v10 = vld [vmem:[%s595_s2 + $0x30] sm:$0xff]  }
   0x2   :  { %v21_v3 = vunpack.c.l.u8.bf16 %v20_v0  ;;  %v180_v4 = vunpack.c.l.u8.bf16 %v357_v1  ;;  %405 = vmatprep.mubr.msk.bf16.mxu1 %vm493_vm0, %v492_v2  ;;  %429 = vmatprep.mubr.msk.bf16.mxu0 %vm493_vm0, %v492_v2  ;;  %v22_v5 = vunpack.c.h.u8.bf16 %v20_v0  ;;  %v181_v6 = vunpack.c.h.u8.bf16 %v357_v1  ;;  %v454_v7 = vld [vmem:[%s594_s1] sm:$0xff]   ;;  %v455_v8 = vld [vmem:[%s594_s1 + $0x8] sm:$0xff]   ;;  %v459_v12 = vld [vmem:[%s595_s2 + $0x38] sm:$0xff]  }
   0x3   :  { %v456_v9 = vld [vmem:[%s595_s2] sm:$0xff]   ;;  %v458_v11 = vld [vmem:[%s595_s2 + $0x8] sm:$0xff]  }
   0x4   :  { %402 = vmatpush3.bf16.msra.mxu1 %v21_v3  ;;  %426 = vmatpush3.bf16.msra.mxu0 %v180_v4 }
   0x5   :  { %403 = vmatprep.subr.bf16.mxu1 %v492_v2  ;;  %427 = vmatprep.subr.bf16.mxu0 %v492_v2 }
   0x8   :  { %404 = vmatpush3.bf16.msra.mxu1 %v22_v5  ;;  %428 = vmatpush3.bf16.msra.mxu0 %v181_v6 }
   0x9   :  { %409 = vmatprep.subr.bf16.mxu1 %v492_v2  ;;  %433 = vmatprep.subr.bf16.mxu0 %v492_v2 }
   0xb   :  { %406 = vmatmul.mubr.msk.bf16.vlgmr.msra.gmra.mrb[0].mxu1 %vm30_vm1, %v454_v7  ;;  %430 = vmatmul.mubr.msk.bf16.vlgmr.msra.gmra.mrb[0].mxu0 %vm30_vm1, %v455_v8 }
   0xc   :  { %410 = vmatpush3.bf16.msra.mxu1 %v456_v9  ;;  %434 = vmatpush3.bf16.msra.mxu0 %v457_v10 }
   0xd   :  { %411 = vmatprep.subr.bf16.mxu1 %v492_v2  ;;  %435 = vmatprep.subr.bf16.mxu0 %v492_v2 }
   0xe   :  { %421 = vmatprep.mubr.msk.bf16.mxu1 %vm493_vm0, %v492_v2  ;;  %445 = vmatprep.mubr.msk.bf16.mxu0 %vm493_vm0, %v492_v2 }
   0xf   :  { %9 = vsyncpa [#allocation3], 0  ;;  %v460_v13 = vld [vmem:[%s595_s2 + $0x10] sm:$0xff]   ;;  %v461_v14 = vld [vmem:[%s595_s2 + $0x40] sm:$0xff]   ;;  %vm130_vm2 = vcmask 785408   ;;  %vm175_vm3 = vcmask 392192  }
  0x10   :  { %412 = vmatpush3.bf16.msra.mxu1 %v458_v11  ;;  %436 = vmatpush3.bf16.msra.mxu0 %v459_v12  ;;  %v462_v15 = vld [vmem:[%s595_s2 + $0x18] sm:$0xff]   ;;  %v463_v16 = vld [vmem:[%s595_s2 + $0x48] sm:$0xff]   ;;  %v464_v17 = vld [vmem:[%s595_s2 + $0x20] sm:$0xff]  }
  0x11   :  { %413 = vmatprep.subr.bf16.mxu1 %v492_v2  ;;  %437 = vmatprep.subr.bf16.mxu0 %v492_v2  ;;  %v465_v18 = vld [vmem:[%s595_s2 + $0x50] sm:$0xff]   ;;  %v466_v19 = vld [vmem:[%s595_s2 + $0x28] sm:$0xff]   ;;  %v467_v20 = vld [vmem:[%s595_s2 + $0x58] sm:$0xff]   ;;  %s494_s2 = smov [#allocation2]  }
  0x12   :  { %v349_v31 = vld [vmem:[%s596_s3] ss:$0 sm:$0xff]  ;;  %s336_s0 = sshll.u32 %s494_s2, 4  ;;  %s337_s0 = int_to_ptr.vmem [resolvable:$true] %s336_s0 }
  0x13   :  { %s468_s3 = scalar_lea.vmem %s337_s0, 512  ;;  %p473_p1 = scmp.lt.s32.totalorder %s337_s0, %s337_s0 }
  0x14   :  { %414 = vmatpush3.bf16.msra.mxu1 %v460_v13  ;;  %438 = vmatpush3.bf16.msra.mxu0 %v461_v14  ;;  %p469_p0 = scmp.ne.s32.totalorder %s337_s0, %s468_s3  ;;  %p474_p2 = scmp.lt.s32.totalorder %s468_s3, %s468_s3 }
  0x15   :  { %415 = vmatprep.subr.bf16.mxu1 %v492_v2  ;;  %439 = vmatprep.subr.bf16.mxu0 %v492_v2 }
  0x16   :  { %p475_p3 = por %p474_p2, %p473_p1 }
  0x18   :  { %416 = vmatpush3.bf16.msra.mxu1 %v462_v15  ;;  %440 = vmatpush3.bf16.msra.mxu0 %v463_v16  ;;  %p476_p4 = pnand %p475_p3, %p469_p0 }
  0x19   :  { %417 = vmatprep.subr.bf16.mxu1 %v492_v2  ;;  %441 = vmatprep.subr.bf16.mxu0 %v492_v2 }
  0x1c   :  { %418 = vmatpush3.bf16.msra.mxu1 %v464_v17  ;;  %442 = vmatpush3.bf16.msra.mxu0 %v465_v18 }
  0x1d   :  { %419 = vmatprep.subr.bf16.mxu1 %v492_v2  ;;  %443 = vmatprep.subr.bf16.mxu0 %v492_v2 }
  0x20   :  { %420 = vmatpush3.bf16.msra.mxu1 %v466_v19  ;;  %444 = vmatpush3.bf16.msra.mxu0 %v467_v20 }
  0xde   :  { %v68_v21 = vpop.f32.mrb[0].mxu1  ;;  %v227_v22 = vpop.f32.mrb[0].mxu0 }
  0xdf   :  { %v407_v23 = vpop.f32.mrb[1].mxu1  ;;  %v431_v24 = vpop.f32.mrb[1].mxu0 }
  0xe0   :  { %v71_v25 = vpop.f32.mrb[2].mxu1  ;;  %v230_v26 = vpop.f32.mrb[2].mxu0 }
  0xe1   :  { %v75_v27 = vpack.c.bf16 %v71_v25, %v68_v21  ;;  %v234_v28 = vpack.c.bf16 %v230_v26, %v227_v22  ;;  %v408_v29 = vpop.f32.mrb[3].mxu1  ;;  %v432_v30 = vpop.f32.mrb[3].mxu0 }
  0xe3   :  { %422 = vmatmul.mubr.msk.bf16.vlgmr.msra.gmra.mrb[4].mxu1 %vm130_vm2, %v75_v27  ;;  %446 = vmatmul.mubr.msk.bf16.vlgmr.msra.gmra.mrb[4].mxu0 %vm130_vm2, %v234_v28 }
 0x1b6   :  { %v168_v32 = vpop.f32.mrb[4].mxu1  ;;  %v321_v33 = vpop.f32.mrb[4].mxu0 }
 0x1b7   :  { %v169_v34 = vadd.f32 %v349_v31, %v168_v32  ;;  %v322_v35 = vadd.f32 %v349_v31, %v321_v33  ;;  %v423_v36 = vpop.f32.mrb[5].mxu1  ;;  %v447_v37 = vpop.f32.mrb[5].mxu0 }
 0x1b8   :  { %v171_v38 = vpop.f32.mrb[6].mxu1  ;;  %v324_v39 = vpop.f32.mrb[6].mxu0 }
 0x1b9   :  { %176 = vst.msk [vmem:[#allocation2] sm:$0xff] %vm175_vm3, %v169_v34  ;;  %329 = vst.msk [vmem:[#allocation2 + $0x10] sm:$0xff] %vm175_vm3, %v322_v35  ;;  %v172_v40 = vadd.f32 %v349_v31, %v171_v38  ;;  %v325_v41 = vadd.f32 %v349_v31, %v324_v39  ;;  %v424_v42 = vpop.f32.mrb[7].mxu1  ;;  %v448_v43 = vpop.f32.mrb[7].mxu0 }
 0x1bb   :  { %177 = vst.msk [vmem:[#allocation2 + $0x8] sm:$0xff] %vm175_vm3, %v172_v40  ;;  %330 = vst.msk [vmem:[#allocation2 + $0x18] sm:$0xff] %vm175_vm3, %v325_v41 }
 0x1bc   :  { %479 = shalt.err (!%p476_p4)
}
 0x1bd   :  { %s480_s23 = scalar_lea.hbm %s597_s4, 512 }
 0x1be   :  { %p481_p5 = scmp.ne.s32.totalorder %s597_s4, %s480_s23  ;;  %p484_p6 = scmp.lt.u32.totalorder %s480_s23, %s597_s4 }
 0x1c0   :  { %p486_p7 = pnand %p484_p6, %p481_p5 }
 0x1c2   :  { %489 = shalt.err (!%p486_p7)
}
 0x1c3   :  { %s495_s1 = smov 128   ;;  %s496_s28 = smov 8  }
 0x1c4   :  { %342 = dma.vmem_to_hbm [thread:$0]  %s337_s0, 512, %s597_s4, [#allocation3], %s495_s1, %s495_s1, %s496_s28  }
 0x1c5   :  { %490 = dma.done.wait [#allocation3], 512  }
 0x1c6   :  { %491 = vsyncadd [#allocation3], 4294966784 }
 0x1c7   :  { %346 = vsyncpa [#allocation3], 1 }

</bundles_post_ra>
